<compile_context>
chip_gen: v7x
topology: tpu7x:2x2x1
jax: 0.10.0
libtpu: 0.0.40
codegen_flags: <defaults>
</compile_context>

<pallas_src>
import functools
from collections import defaultdict

import jax
import jax.numpy as jnp
from jax.experimental import pallas as pl
from jax.experimental.pallas import tpu as pltpu

ALPHA = 0.1
_LANE = 128
_MIB = 1 << 20


# ------------------------------ small helpers ------------------------------ #

def _round_up(x, m):
    return ((x + m - 1) // m) * m


def _vmem_capacity_bytes():
    try:
        return int(pltpu.get_tpu_info().vmem_capacity_bytes)
    except Exception:
        return 64 * _MIB        # conservative default (v7x per-TensorCore VMEM)


def _vmem_limit(needed_bytes, cap):
    return int(min(int(0.9 * cap), max(needed_bytes + 8 * _MIB, 32 * _MIB)))


def _pick_div(n, prefs):
    """Largest preferred tile that divides n.  n is always pre-padded to a
    multiple of 128 and 128 is in every pref list, so this never falls back to
    the full extent (fixes the old VMEM-OOM hazard for non-divisible N)."""
    for p in prefs:
        if n % p == 0:
            return p
    raise ValueError(f"no tile in {prefs} divides {n}")


# --------------------------- fused encode+classify ------------------------- #

def _encode_classify_kernel(x_ref, we_ref, wc_ref, h_ref, local_ref):
    # h = ReLU(X @ W_enc) in f32 (embedding needs tight accuracy).
    h = jnp.dot(x_ref[...], we_ref[...], preferred_element_type=jnp.float32)
    h = jnp.maximum(h, 0.0)
    h_ref[...] = h.astype(h_ref.dtype)
    # local = h @ [W_cls_0 | ... | W_cls_{K-1}]  -- bf16 operands, f32 accumulate.
    local_ref[...] = jnp.dot(
        h.astype(jnp.bfloat16), wc_ref[...],
        preferred_element_type=jnp.float32).astype(local_ref.dtype)


def encode_and_classify(x_pad, w_enc, w_cls_cat_bf16, cap):
    """x_pad: [N_pad, F] f32, w_enc: [F, H] f32, w_cls_cat_bf16: [H, C_pad] bf16
       -> (h [N_pad, H] f32, local [N_pad, C_pad] f32)."""
    n, f = x_pad.shape
    hdim = w_enc.shape[1]
    c = w_cls_cat_bf16.shape[1]

    def need_bytes(t):
        return (2 * t * f * 4 + 2 * f * hdim * 4 + 2 * hdim * c * 2
                + 2 * t * hdim * 4 + 2 * t * c * 4)

    cands = [t for t in (1024, 512, 256, 128) if n % t == 0]
    tm = next((t for t in cands if need_bytes(t) <= int(0.5 * cap)), cands[-1])
    # TODO(synk): K-tile in_dim with an f32 accumulator if in_dim is so large
    # that even tm=128 exceeds the VMEM budget (not needed at these sizes).

    return pl.pallas_call(
        _encode_classify_kernel,
        out_shape=(
            jax.ShapeDtypeStruct((n, hdim), jnp.float32),
            jax.ShapeDtypeStruct((n, c), jnp.float32),
        ),
        grid_spec=pltpu.PrefetchScalarGridSpec(
            num_scalar_prefetch=0,
            grid=(n // tm,),
            in_specs=[
                pl.BlockSpec((tm, f), lambda i: (i, 0)),
                pl.BlockSpec((f, hdim), lambda i: (0, 0)),
                pl.BlockSpec((hdim, c), lambda i: (0, 0)),
            ],
            out_specs=[
                pl.BlockSpec((tm, hdim), lambda i: (i, 0)),
                pl.BlockSpec((tm, c), lambda i: (i, 0)),
            ],
        ),
        compiler_params=pltpu.CompilerParams(
            dimension_semantics=("parallel",),
            vmem_limit_bytes=_vmem_limit(need_bytes(tm), cap)),
    )(x_pad, w_enc, w_cls_cat_bf16)


# ------------------- one-time adjacency normalization ---------------------- #

def _normalize_kernel(a_ref, dr_ref, dc_ref, o_ref, *, tm):
    # A_hat tile = D^-1/2 (A + I) D^-1/2, cast to bf16 (computed ONCE per graph).
    i = pl.program_id(0)
    n = o_ref.shape[1]
    rows = jax.lax.broadcasted_iota(jnp.int32, (tm, n), 0) + i * tm
    cols = jax.lax.broadcasted_iota(jnp.int32, (tm, n), 1)
    a = a_ref[...] + (rows == cols).astype(jnp.float32)          # A + I
    o_ref[...] = (a * dr_ref[...] * dc_ref[...]).astype(o_ref.dtype)


def normalize_adjacency(adj, n_pad, cap):
    """adj: [N, N] raw adjacency (no self loops) -> bf16 A_hat padded to [N_pad, N_pad]."""
    n = adj.shape[0]
    adj = adj.astype(jnp.float32)
    deg = jnp.sum(adj, axis=1) + 1.0                             # degree of A + I
    a_pad = jnp.pad(adj, ((0, n_pad - n), (0, n_pad - n)))
    dinv = jax.lax.rsqrt(jnp.pad(deg, (0, n_pad - n), constant_values=1.0))
    dr = dinv.reshape(n_pad, 1)
    dc = dinv.reshape(1, n_pad)

    def need_bytes(t):
        return 2 * t * n_pad * 4 + 2 * t * n_pad * 2 + 2 * n_pad * 4 + 2 * _MIB

    cands = [t for t in (512, 256, 128, 64, 32, 16, 8) if n_pad % t == 0]
    tm = next((t for t in cands if need_bytes(t) <= int(0.6 * cap)), cands[-1])

    return pl.pallas_call(
        functools.partial(_normalize_kernel, tm=tm),
        out_shape=jax.ShapeDtypeStruct((n_pad, n_pad), jnp.bfloat16),
        grid_spec=pltpu.PrefetchScalarGridSpec(
            num_scalar_prefetch=0,
            grid=(n_pad // tm,),
            in_specs=[
                pl.BlockSpec((tm, n_pad), lambda i: (i, 0)),
                pl.BlockSpec((tm, 1), lambda i: (i, 0)),
                pl.BlockSpec((1, n_pad), lambda i: (0, 0)),
            ],
            out_specs=pl.BlockSpec((tm, n_pad), lambda i: (i, 0)),
        ),
        compiler_params=pltpu.CompilerParams(
            dimension_semantics=("parallel",),
            vmem_limit_bytes=_vmem_limit(need_bytes(tm), cap)),
    )(a_pad, dr, dc)


# ------------------------ PPR: resident-A fused path ----------------------- #

def _ppr_resident_kernel(ah_ref, local_ref, o_ref, preds_ref, *, alpha):
    # grid = (graph, step); A_hat/local blocks are constant across the step
    # axis -> DMA'd once per graph and VMEM-resident for all power iterations.
    s = pl.program_id(1)

    @pl.when(s == 0)
    def _():
        preds_ref[...] = local_ref[...]

    new = ((1.0 - alpha) * jnp.dot(ah_ref[...],
                                   preds_ref[...].astype(jnp.bfloat16),
                                   preferred_element_type=jnp.float32)
           + alpha * local_ref[...])
    preds_ref[...] = new

    @pl.when(s == pl.num_programs(1) - 1)
    def _():
        o_ref[...] = new.astype(o_ref.dtype)


def ppr_resident(local_b, ah_b, step, alpha, cap):
    """local_b: [G, N_pad, C_pad] f32, ah_b: [G, N_pad, N_pad] bf16."""
    g, n, c = local_b.shape
    need = 2 * n * n * 2 + 4 * n * c * 4 + n * c * 4 + 4 * _MIB
    return pl.pallas_call(
        functools.partial(_ppr_resident_kernel, alpha=alpha),
        out_shape=jax.ShapeDtypeStruct((g, n, c), jnp.float32),
        grid_spec=pltpu.PrefetchScalarGridSpec(
            num_scalar_prefetch=0,
            grid=(g, step),
            in_specs=[
                pl.BlockSpec((pl.Squeezed(), n, n), lambda gi, s: (gi, 0, 0)),
                pl.BlockSpec((pl.Squeezed(), n, c), lambda gi, s: (gi, 0, 0)),
            ],
            out_specs=pl.BlockSpec((pl.Squeezed(), n, c),
                                   lambda gi, s: (gi, 0, 0)),
            scratch_shapes=[pltpu.VMEM((n, c), jnp.float32)],
        ),
        compiler_params=pltpu.CompilerParams(
            dimension_semantics=("parallel", "arbitrary"),
            vmem_limit_bytes=_vmem_limit(need, cap)),
    )(ah_b, local_b)


# ----------------------- PPR: streaming fallback path ---------------------- #

def _ppr_stream_kernel(ah_ref, p_ref, local_ref, o_ref, acc_ref, *, alpha):
    k = pl.program_id(1)

    @pl.when(k == 0)
    def _():
        acc_ref[...] = jnp.zeros_like(acc_ref)

    acc_ref[...] += jnp.dot(ah_ref[...], p_ref[...].astype(jnp.bfloat16),
                            preferred_element_type=jnp.float32)

    @pl.when(k == pl.num_programs(1) - 1)
    def _():
        o_ref[...] = ((1.0 - alpha) * acc_ref[...]
                      + alpha * local_ref[...].astype(jnp.float32)
                      ).astype(o_ref.dtype)


def ppr_streaming(local, ah, step, alpha, cap):
    """local: [N_pad, C_pad] f32, ah: [N_pad, N_pad] bf16 (precomputed A_hat)."""
    n, c = local.shape
    tm = _pick_div(n, (512, 256, 128))
    tk_cands = [t for t in (2048, 1024, 512, 256, 128) if n % t == 0]

    def need_bytes(tk):
        return (2 * tm * tk * 2 + 2 * tk * c * 4 + 4 * tm * c * 4
                + tm * c * 4 + 4 * _MIB)

    tk = next((t for t in tk_cands if need_bytes(t) <= int(0.5 * cap)),
              tk_cands[-1])
    limit = _vmem_limit(need_bytes(tk), cap)

    def step_call(out_dtype):
        return pl.pallas_call(
            functools.partial(_ppr_stream_kernel, alpha=alpha),
            out_shape=jax.ShapeDtypeStruct((n, c), out_dtype),
            grid_spec=pltpu.PrefetchScalarGridSpec(
                num_scalar_prefetch=0,
                grid=(n // tm, n // tk),
                in_specs=[
                    pl.BlockSpec((tm, tk), lambda i, k: (i, k)),   # A_hat tile
                    pl.BlockSpec((tk, c), lambda i, k: (k, 0)),    # prev preds
                    pl.BlockSpec((tm, c), lambda i, k: (i, 0)),    # local
                ],
                out_specs=pl.BlockSpec((tm, c), lambda i, k: (i, 0)),
                scratch_shapes=[pltpu.VMEM((tm, c), jnp.float32)],
            ),
            compiler_params=pltpu.CompilerParams(
                dimension_semantics=("parallel", "arbitrary"),
                vmem_limit_bytes=limit),
        )

    preds = local
    for s in range(step):    # each step needs the FULL previous preds
        out_dtype = jnp.float32 if s == step - 1 else jnp.bfloat16
        preds = step_call(out_dtype)(ah, preds, local)
    return preds


# ------------------------------- JAX glue ---------------------------------- #

def pmgcda_forward(params, num_source, features_s_list, features_t,
                   A_s_list, A_t, step, force_streaming=False):
    cap = _vmem_capacity_bytes()
    w_enc = params["w_enc"]                                  # [in_dim, hidden]
    w_cls_list = params["w_cls"]                             # list of [hidden, classes]
    num_classes = w_cls_list[0].shape[1]

    c_total = num_source * num_classes
    c_pad = _round_up(c_total, _LANE)                        # lane-dense columns
    w_cls_cat = jnp.concatenate(w_cls_list, axis=1)
    w_cls_cat = jnp.pad(w_cls_cat, ((0, 0), (0, c_pad - c_total)))
    w_cls_cat = w_cls_cat.astype(jnp.bfloat16)

    # ---- every graph's features through ONE fused encode+classify call ----
    feats = list(features_s_list) + [features_t]
    sizes = [int(f.shape[0]) for f in feats]
    x_all = jnp.concatenate(feats, axis=0).astype(jnp.float32)
    n_total = x_all.shape[0]
    n_total_pad = _round_up(n_total, _LANE)
    x_all = jnp.pad(x_all, ((0, n_total_pad - n_total), (0, 0)))
    h_all, local_all = encode_and_classify(
        x_all, w_enc.astype(jnp.float32), w_cls_cat, cap)

    offs, o = [], 0
    for s in sizes:
        offs.append((o, o + s))
        o += s
    h_list = [h_all[a:b] for (a, b) in offs]
    local_list = [local_all[a:b] for (a, b) in offs]         # [n_g, c_pad] f32

    # ---- A_hat precompute (once per graph) + propagation ----
    adjs = list(A_s_list) + [A_t]
    n_pads = [_round_up(int(a.shape[0]), _LANE) for a in adjs]
    ah_list = [normalize_adjacency(adjs[i], n_pads[i], cap)
               for i in range(len(adjs))]

    results = [None] * len(adjs)
    groups = defaultdict(list)
    for gi, npad in enumerate(n_pads):
        groups[npad].append(gi)

    for npad, idxs in sorted(groups.items()):
        local_pads = [jnp.pad(local_list[gi], ((0, npad - sizes[gi]), (0, 0)))
                      for gi in idxs]
        resident_need = (2 * npad * npad * 2 + 4 * npad * c_pad * 4
                         + npad * c_pad * 4 + 4 * _MIB)
        resident_ok = (not force_streaming) and resident_need <= int(0.7 * cap)
        if step <= 0:
            for j, gi in enumerate(idxs):
                results[gi] = local_pads[j]
        elif resident_ok:
            ah_b = jnp.stack([ah_list[gi] for gi in idxs])
            local_b = jnp.stack(local_pads)
            out_b = ppr_resident(local_b, ah_b, int(step), ALPHA, cap)
            for j, gi in enumerate(idxs):
                results[gi] = out_b[j]
        else:
            for j, gi in enumerate(idxs):
                results[gi] = ppr_streaming(local_pads[j], ah_list[gi],
                                            int(step), ALPHA, cap)

    def sl(gi, src):
        return results[gi][:sizes[gi], src * num_classes:(src + 1) * num_classes]

    pred_logit_s_list = [sl(i, i) for i in range(num_source)]
    pred_logit_t_list = [sl(num_source, i) for i in range(num_source)]
    emb_s_list = [h_list[i].reshape(sizes[i], -1) for i in range(num_source)]
    emb_t = h_list[num_source].reshape(sizes[num_source], -1)
    return pred_logit_s_list, pred_logit_t_list, emb_s_list, emb_t


# Pure-JAX f32 reference (mirrors the PyTorch forward) for a sanity check.
def _reference_forward(params, num_source, features_s_list, features_t,
                       A_s_list, A_t, step):
    w_enc, w_cls = params["w_enc"], params["w_cls"]

    def calc_a_hat(adj):
        n = adj.shape[0]
        a = adj + jnp.eye(n, dtype=adj.dtype)
        dis = jax.lax.rsqrt(jnp.sum(a, axis=1))
        return a * dis[:, None] * dis[None, :]

    def enc(x):
        return jnp.maximum(x @ w_enc, 0.0)

    def ppr(local, a_hat):
        preds = local
        for _ in range(int(step)):
            preds = (1.0 - ALPHA) * (a_hat @ preds) + ALPHA * local
        return preds

    h_s = [enc(f) for f in features_s_list]
    logit_s = [ppr(h_s[i] @ w_cls[i], calc_a_hat(A_s_list[i]))
               for i in range(num_source)]
    h_t = enc(features_t)
    a_hat_t = calc_a_hat(A_t)
    logit_t = [ppr(h_t @ w_cls[i], a_hat_t) for i in range(num_source)]
    return logit_s, logit_t, h_s, h_t


# --------------------------------- main ------------------------------------ #

if __name__ == "__main__":
    num_source = 2
    in_dim = 32
    num_hidden = 16
    num_classes = 8
    n_s = 16          # nodes per source graph
    n_t = 16          # nodes in target graph
    step = 3          # PPR power-iteration count

    key = jax.random.PRNGKey(0)
    keys = jax.random.split(key, 8)

    # Deterministic parameters (weights already [in_features, out_features]).
    w_enc = 0.1 * jax.random.normal(keys[0], (in_dim, num_hidden), jnp.float32)
    w_cls = [0.1 * jax.random.normal(keys[1 + i], (num_hidden, num_classes),
                                     jnp.float32) for i in range(num_source)]
    params = {"w_enc": w_enc, "w_cls": w_cls}

    features_s_list = [jax.random.normal(keys[3 + i], (n_s, in_dim), jnp.float32)
                       for i in range(num_source)]
    features_t = jax.random.normal(keys[5], (n_t, in_dim), jnp.float32)

    def make_adj(k, n):
        r = jax.random.uniform(k, (n, n))
        a = (r < 0.3).astype(jnp.float32)
        a = jnp.maximum(a, a.T)                            # symmetric
        return a * (1.0 - jnp.eye(n, dtype=jnp.float32))   # no self loops

    A_s_list = [make_adj(keys[6], n_s), make_adj(keys[7], n_s)]
    A_t = make_adj(jax.random.PRNGKey(42), n_t)

    ref_s, ref_t, ref_hs, ref_ht = _reference_forward(
        params, num_source, features_s_list, features_t, A_s_list, A_t, step)

    # Exercise BOTH propagation paths (resident-A fused and streaming fallback).
    for force_streaming in (False, True):
        out = pmgcda_forward(params, num_source, features_s_list, features_t,
                             A_s_list, A_t, step,
                             force_streaming=force_streaming)
        jax.block_until_ready(out)
        pred_logit_s_list, pred_logit_t_list, emb_s_list, emb_t = out

        assert len(pred_logit_s_list) == num_source
        assert len(pred_logit_t_list) == num_source
        assert pred_logit_s_list[0].shape == (n_s, num_classes)
        assert pred_logit_t_list[0].shape == (n_t, num_classes)
        assert emb_s_list[0].shape == (n_s, num_hidden)
        assert emb_t.shape == (n_t, num_hidden)

        # Loose tolerance on logits (bf16 A_hat / preds / classifier operands),
        # tight tolerance on embeddings (f32 encoder matmul).
        for i in range(num_source):
            assert jnp.allclose(pred_logit_s_list[i], ref_s[i], atol=3e-2, rtol=3e-2)
            assert jnp.allclose(pred_logit_t_list[i], ref_t[i], atol=3e-2, rtol=3e-2)
            assert jnp.allclose(emb_s_list[i], ref_hs[i], atol=1e-4, rtol=1e-4)
        assert jnp.allclose(emb_t, ref_ht, atol=1e-4, rtol=1e-4)

    print("KERNEL_OK")
</pallas_src>

<mosaic_0001>
module attributes {stable_mosaic.version = 11 : i64} {
  func.func @_encode_classify_kernel(%arg0: i32, %arg1: memref<128x32xf32, #tpu.memory_space<vmem>>, %arg2: memref<32x16xf32, #tpu.memory_space<vmem>>, %arg3: memref<16x128xbf16, #tpu.memory_space<vmem>>, %arg4: memref<128x16xf32, #tpu.memory_space<vmem>>, %arg5: memref<128x128xf32, #tpu.memory_space<vmem>>) attributes {dimension_semantics = [#tpu.dimension_semantics<parallel>], iteration_bounds = array<i64: 1>, scalar_prefetch = 0 : i64, scratch_operands = 0 : i64, tpu.core_type = #tpu.core_type<tc>, window_params = [{transform_indices = @transform_0, window_bounds = array<i64: 128, 32>}, {pipeline_mode = #tpu.pipeline_mode<synchronous>, transform_indices = @transform_1, window_bounds = array<i64: 32, 16>}, {pipeline_mode = #tpu.pipeline_mode<synchronous>, transform_indices = @transform_2, window_bounds = array<i64: 16, 128>}, {transform_indices = @transform_3, window_bounds = array<i64: 128, 16>}, {transform_indices = @transform_4, window_bounds = array<i64: 128, 128>}]} {
    %c0 = arith.constant 0 : index
    %c0_0 = arith.constant 0 : index
    %0 = vector.load %arg1[%c0, %c0_0] : memref<128x32xf32, #tpu.memory_space<vmem>>, vector<128x32xf32>
    %c0_1 = arith.constant 0 : index
    %c0_2 = arith.constant 0 : index
    %1 = vector.load %arg2[%c0_1, %c0_2] : memref<32x16xf32, #tpu.memory_space<vmem>>, vector<32x16xf32>
    %cst = arith.constant dense<0.000000e+00> : vector<128x16xf32>
    %2 = tpu.matmul %0, %1, %cst {dimension_numbers = #tpu.dot_dimension_numbers<[1], [0], [0], [1], [0, 0, 1, 1], [], []>} : vector<128x32xf32>, vector<32x16xf32>, vector<128x16xf32> -> vector<128x16xf32>
    %cst_3 = arith.constant 0.000000e+00 : f32
    %3 = vector.broadcast %cst_3 : f32 to vector<128x16xf32>
    %4 = arith.maximumf %2, %3 : vector<128x16xf32>
    %c0_4 = arith.constant 0 : index
    %c0_5 = arith.constant 0 : index
    %5 = vector.load %arg4[%c0_4, %c0_5] : memref<128x16xf32, #tpu.memory_space<vmem>>, vector<128x16xf32>
    tpu.vector_store %arg4[%c0_4, %c0_5], %4 {strides = array<i32>} : memref<128x16xf32, #tpu.memory_space<vmem>>, vector<128x16xf32>,
    %6 = arith.truncf %4 : vector<128x16xf32> to vector<128x16xbf16>
    %c0_6 = arith.constant 0 : index
    %c0_7 = arith.constant 0 : index
    %7 = vector.load %arg3[%c0_6, %c0_7] : memref<16x128xbf16, #tpu.memory_space<vmem>>, vector<16x128xbf16>
    %cst_8 = arith.constant dense<0.000000e+00> : vector<128x128xf32>
    %8 = tpu.matmul %6, %7, %cst_8 {dimension_numbers = #tpu.dot_dimension_numbers<[1], [0], [0], [1], [0, 0, 1, 1], [], []>} : vector<128x16xbf16>, vector<16x128xbf16>, vector<128x128xf32> -> vector<128x128xf32>
    %c0_9 = arith.constant 0 : index
    %c0_10 = arith.constant 0 : index
    %9 = vector.load %arg5[%c0_9, %c0_10] : memref<128x128xf32, #tpu.memory_space<vmem>>, vector<128x128xf32>
    tpu.vector_store %arg5[%c0_9, %c0_10], %8 {strides = array<i32>} : memref<128x128xf32, #tpu.memory_space<vmem>>, vector<128x128xf32>,
    return
  }
  func.func @transform_0(%arg0: i32) -> (i32, i32) {
    %c0_i32 = arith.constant 0 : i32
    %c0_i32_0 = arith.constant 0 : i32
    return %arg0, %c0_i32 : i32, i32
  }
  func.func @transform_1(%arg0: i32) -> (i32, i32) {
    %c0_i32 = arith.constant 0 : i32
    %c0_i32_0 = arith.constant 0 : i32
    %c0_i32_1 = arith.constant 0 : i32
    return %c0_i32, %c0_i32_0 : i32, i32
  }
  func.func @transform_2(%arg0: i32) -> (i32, i32) {
    %c0_i32 = arith.constant 0 : i32
    %c0_i32_0 = arith.constant 0 : i32
    %c0_i32_1 = arith.constant 0 : i32
    return %c0_i32, %c0_i32_0 : i32, i32
  }
  func.func @transform_3(%arg0: i32) -> (i32, i32) {
    %c0_i32 = arith.constant 0 : i32
    %c0_i32_0 = arith.constant 0 : i32
    return %arg0, %c0_i32 : i32, i32
  }
  func.func @transform_4(%arg0: i32) -> (i32, i32) {
    %c0_i32 = arith.constant 0 : i32
    %c0_i32_0 = arith.constant 0 : i32
    return %arg0, %c0_i32 : i32, i32
  }
}

</mosaic_0001>

<bundles_post_ra>
// kernel: tpu_custom_call.1
= control target key start
LH: loop header
LB: loop body
LE: loop exit
PB: predicated region body
PF: predicated region fallthrough
CT: control target
= control target key end

     0   :  { %vm38_vm0 = vcmask 261120   ;;  %s769_s0 = inlined_call_operand.vmem [shape: f32[128,32], index: 0, kind: input, shape index: {}]   ;;  %s770_s1 = inlined_call_operand.vmem [shape: f32[32,16], index: 1, kind: input, shape index: {}]   ;;  %s771_s2 = inlined_call_operand.vmem [shape: bf16[16,128], index: 2, kind: input, shape index: {}]   ;;  %s772_s3 = inlined_call_operand.vmem [shape: f32[128,16], index: 3, kind: output, shape index: {0}]   ;;  %s773_s4 = inlined_call_operand.hbm [shape: f32[128,128], index: 4, kind: output, shape index: {1}]  }
   0x1   :  { %v34_v0 = vld [vmem:[%s770_s1] sm:$0xff]  ;;  %v35_v1 = vld [vmem:[%s770_s1 + $0x8] sm:$0xff]  ;;  %v36_v2 = vld [vmem:[%s770_s1 + $0x10] sm:$0xff] }
   0x2   :  { %v542_v3 = vpack.c.bf16 %v35_v1, %v34_v0  ;;  %v37_v4 = vld [vmem:[%s770_s1 + $0x18] sm:$0xff]  ;;  %v18_v5 = vld [vmem:[%s769_s0] sm:$0xff] }
   0x3   :  { %v546_v6 = vpack.c.bf16 %v37_v4, %v36_v2  ;;  %500 = vmatprep.mubr.msk.f32.mxu0 %vm38_vm0, %v18_v5 }
   0x4   :  { %543 = vmatprep.subr.bf16.mxu0 %v542_v3 }
   0x5   :  { %545 = vmatpush3.bf16.msra.mxu0 %v542_v3 }
   0x6   :  { %547 = vmatprep.subr.bf16.mxu0 %v546_v6 }
   0x7   :  { %10 = vsyncpa [#allocation3], 0  ;;  %v19_v7 = vld [vmem:[%s769_s0 + $0x8] sm:$0xff]  ;;  %v20_v8 = vld [vmem:[%s769_s0 + $0x10] sm:$0xff]  ;;  %vm248_vm1 = vcmask 130048  }
   0x8   :  { %v21_v9 = vld [vmem:[%s769_s0 + $0x18] sm:$0xff]  ;;  %v22_v10 = vld [vmem:[%s769_s0 + $0x20] sm:$0xff]  ;;  %v23_v11 = vld [vmem:[%s769_s0 + $0x28] sm:$0xff] }
   0x9   :  { %549 = vmatpush3.bf16.msra.mxu0 %v546_v6  ;;  %v24_v12 = vld [vmem:[%s769_s0 + $0x30] sm:$0xff]  ;;  %v25_v13 = vld [vmem:[%s769_s0 + $0x38] sm:$0xff]  ;;  %v26_v14 = vld [vmem:[%s769_s0 + $0x40] sm:$0xff] }
   0xa   :  { %v27_v15 = vld [vmem:[%s769_s0 + $0x48] sm:$0xff]  ;;  %v28_v16 = vld [vmem:[%s769_s0 + $0x50] sm:$0xff]  ;;  %v29_v17 = vld [vmem:[%s769_s0 + $0x58] sm:$0xff] }
   0xb   :  { %v30_v18 = vld [vmem:[%s769_s0 + $0x60] sm:$0xff]  ;;  %v31_v19 = vld [vmem:[%s769_s0 + $0x68] sm:$0xff]  ;;  %v32_v20 = vld [vmem:[%s769_s0 + $0x70] sm:$0xff] }
   0xc   :  { %501 = vmatmul.mubr.msk.f32.vlgmr.msra.gmra.mrb[0].mxu0 %vm38_vm0, %v19_v7  ;;  %v33_v21 = vld [vmem:[%s769_s0 + $0x78] sm:$0xff]  ;;  %v553_v22 = vld [vmem:[%s771_s2] sm:$0xff]  }
   0xd   :  { %503 = vmatprep.mubr.msk.f32.mxu0 %vm38_vm0, %v20_v8  ;;  %524 = vmatprep.subr.bf16.mxu1 %v553_v22 }
   0xe   :  { %525 = vmatpush3.bf16.msra.mxu1 %v553_v22 }
  0x10   :  { %504 = vmatmul.mubr.msk.f32.gmra.mrb[2].mxu0 %vm38_vm0, %v21_v9 }
  0x11   :  { %506 = vmatprep.mubr.msk.f32.mxu0 %vm38_vm0, %v22_v10 }
  0x14   :  { %507 = vmatmul.mubr.msk.f32.gmra.mrb[4].mxu0 %vm38_vm0, %v23_v11 }
  0x15   :  { %509 = vmatprep.mubr.msk.f32.mxu0 %vm38_vm0, %v24_v12 }
  0x18   :  { %510 = vmatmul.mubr.msk.f32.gmra.mrb[6].mxu0 %vm38_vm0, %v25_v13 }
  0x19   :  { %512 = vmatprep.mubr.msk.f32.mxu0 %vm38_vm0, %v26_v14 }
  0x1c   :  { %513 = vmatmul.mubr.msk.f32.gmra.mrb[8].mxu0 %vm38_vm0, %v27_v15 }
  0x1d   :  { %515 = vmatprep.mubr.msk.f32.mxu0 %vm38_vm0, %v28_v16 }
  0x20   :  { %516 = vmatmul.mubr.msk.f32.gmra.mrb[10].mxu0 %vm38_vm0, %v29_v17 }
  0x21   :  { %518 = vmatprep.mubr.msk.f32.mxu0 %vm38_vm0, %v30_v18 }
  0x24   :  { %519 = vmatmul.mubr.msk.f32.gmra.mrb[12].mxu0 %vm38_vm0, %v31_v19 }
  0x25   :  { %521 = vmatprep.mubr.msk.f32.mxu0 %vm38_vm0, %v32_v20 }
  0x28   :  { %522 = vmatmul.mubr.msk.f32.gmra.mrb[14].mxu0 %vm38_vm0, %v33_v21 }
  0xdf   :  { %v502_v23 = vpop.f32.mrb[0].mxu0 }
  0xe0   :  { %v233_v24 = vmax.f32 %v502_v23, 0.0  ;;  %v153_v25 = vpop.f32.mrb[1].mxu0 }
  0xe1   :  { %v232_v26 = vmax.f32 %v153_v25, 0.0 }
  0xe2   :  { %250 = vst.msk [vmem:[%s772_s3 + $0x8] sm:$0xff] %vm248_vm1, %v233_v24 }
  0xe3   :  { %249 = vst.msk [vmem:[%s772_s3] sm:$0xff] %vm248_vm1, %v232_v26  ;;  %v505_v27 = vpop.f32.mrb[2].mxu0  ;;  %v265_v28 = vpack.c.bf16 %v233_v24, %v232_v26 }
  0xe4   :  { %v235_v29 = vmax.f32 %v505_v27, 0.0  ;;  %v163_v30 = vpop.f32.mrb[3].mxu0 }
  0xe5   :  { %v234_v31 = vmax.f32 %v163_v30, 0.0  ;;  %526 = vmatprep.mubr.msk.bf16.mxu1 %vm248_vm1, %v265_v28 }
  0xe6   :  { %252 = vst.msk [vmem:[%s772_s3 + $0x18] sm:$0xff] %vm248_vm1, %v235_v29 }
  0xe7   :  { %251 = vst.msk [vmem:[%s772_s3 + $0x10] sm:$0xff] %vm248_vm1, %v234_v31  ;;  %v266_v32 = vpack.c.bf16 %v235_v29, %v234_v31  ;;  %v508_v33 = vpop.f32.mrb[4].mxu0 }
  0xe8   :  { %v237_v34 = vmax.f32 %v508_v33, 0.0  ;;  %v173_v35 = vpop.f32.mrb[5].mxu0 }
  0xe9   :  { %v236_v36 = vmax.f32 %v173_v35, 0.0  ;;  %527 = vmatmul.mubr.msk.bf16.vlgmr.msra.gmra.mrb[0].mxu1 %vm248_vm1, %v266_v32 }
  0xea   :  { %254 = vst.msk [vmem:[%s772_s3 + $0x28] sm:$0xff] %vm248_vm1, %v237_v34 }
  0xeb   :  { %253 = vst.msk [vmem:[%s772_s3 + $0x20] sm:$0xff] %vm248_vm1, %v236_v36  ;;  %v267_v37 = vpack.c.bf16 %v237_v34, %v236_v36  ;;  %v511_v38 = vpop.f32.mrb[6].mxu0 }
  0xec   :  { %v239_v39 = vmax.f32 %v511_v38, 0.0  ;;  %v183_v40 = vpop.f32.mrb[7].mxu0 }
  0xed   :  { %v238_v41 = vmax.f32 %v183_v40, 0.0  ;;  %530 = vmatprep.mubr.msk.bf16.mxu1 %vm248_vm1, %v267_v37 }
  0xee   :  { %256 = vst.msk [vmem:[%s772_s3 + $0x38] sm:$0xff] %vm248_vm1, %v239_v39 }
  0xef   :  { %255 = vst.msk [vmem:[%s772_s3 + $0x30] sm:$0xff] %vm248_vm1, %v238_v41  ;;  %v268_v42 = vpack.c.bf16 %v239_v39, %v238_v41  ;;  %v514_v43 = vpop.f32.mrb[8].mxu0 }
  0xf0   :  { %v241_v44 = vmax.f32 %v514_v43, 0.0  ;;  %v193_v45 = vpop.f32.mrb[9].mxu0 }
  0xf1   :  { %v240_v46 = vmax.f32 %v193_v45, 0.0  ;;  %531 = vmatmul.mubr.msk.bf16.gmra.mrb[4].mxu1 %vm248_vm1, %v268_v42 }
  0xf2   :  { %258 = vst.msk [vmem:[%s772_s3 + $0x48] sm:$0xff] %vm248_vm1, %v241_v44 }
  0xf3   :  { %257 = vst.msk [vmem:[%s772_s3 + $0x40] sm:$0xff] %vm248_vm1, %v240_v46  ;;  %v269_v47 = vpack.c.bf16 %v241_v44, %v240_v46  ;;  %v517_v48 = vpop.f32.mrb[10].mxu0 }
  0xf4   :  { %v243_v49 = vmax.f32 %v517_v48, 0.0  ;;  %v203_v50 = vpop.f32.mrb[11].mxu0 }
  0xf5   :  { %v242_v51 = vmax.f32 %v203_v50, 0.0  ;;  %534 = vmatprep.mubr.msk.bf16.mxu1 %vm248_vm1, %v269_v47 }
  0xf6   :  { %260 = vst.msk [vmem:[%s772_s3 + $0x58] sm:$0xff] %vm248_vm1, %v243_v49 }
  0xf7   :  { %259 = vst.msk [vmem:[%s772_s3 + $0x50] sm:$0xff] %vm248_vm1, %v242_v51  ;;  %v270_v52 = vpack.c.bf16 %v243_v49, %v242_v51  ;;  %v520_v53 = vpop.f32.mrb[12].mxu0 }
  0xf8   :  { %v245_v54 = vmax.f32 %v520_v53, 0.0  ;;  %v213_v55 = vpop.f32.mrb[13].mxu0 }
  0xf9   :  { %v244_v56 = vmax.f32 %v213_v55, 0.0  ;;  %535 = vmatmul.mubr.msk.bf16.gmra.mrb[8].mxu1 %vm248_vm1, %v270_v52 }
  0xfa   :  { %262 = vst.msk [vmem:[%s772_s3 + $0x68] sm:$0xff] %vm248_vm1, %v245_v54 }
  0xfb   :  { %261 = vst.msk [vmem:[%s772_s3 + $0x60] sm:$0xff] %vm248_vm1, %v244_v56  ;;  %v271_v57 = vpack.c.bf16 %v245_v54, %v244_v56  ;;  %v523_v58 = vpop.f32.mrb[14].mxu0 }
  0xfc   :  { %v247_v59 = vmax.f32 %v523_v58, 0.0  ;;  %v223_v60 = vpop.f32.mrb[15].mxu0 }
  0xfd   :  { %v246_v61 = vmax.f32 %v223_v60, 0.0  ;;  %538 = vmatprep.mubr.msk.bf16.mxu1 %vm248_vm1, %v271_v57 }
  0xfe   :  { %264 = vst.msk [vmem:[%s772_s3 + $0x78] sm:$0xff] %vm248_vm1, %v247_v59 }
  0xff   :  { %263 = vst.msk [vmem:[%s772_s3 + $0x70] sm:$0xff] %vm248_vm1, %v246_v61  ;;  %v272_v62 = vpack.c.bf16 %v247_v59, %v246_v61  ;;  %s578_s3 = smov [#allocation2]  }
 0x100   :  { %s425_s5 = sshll.u32 %s578_s3, 4  ;;  %s426_s5 = int_to_ptr.vmem [resolvable:$true] %s425_s5 }
 0x101   :  { %539 = vmatmul.mubr.msk.bf16.gmra.mrb[12].mxu1 %vm248_vm1, %v272_v62  ;;  %s554_s2 = scalar_lea.vmem %s426_s5, 2048  ;;  %p559_p1 = scmp.lt.s32.totalorder %s426_s5, %s426_s5 }
 0x102   :  { %p555_p0 = scmp.ne.s32.totalorder %s426_s5, %s554_s2  ;;  %p560_p2 = scmp.lt.s32.totalorder %s554_s2, %s554_s2 }
 0x104   :  { %p561_p3 = por %p560_p2, %p559_p1 }
 0x106   :  { %p562_p4 = pnand %p561_p3, %p555_p0 }
 0x1bc   :  { %v528_v63 = vpop.f32.mrb[0].mxu1 }
 0x1bd   :  { %404 = vst [vmem:[#allocation2 + $0x10] sm:$0xff] %v528_v63  ;;  %v339_v0 = vpop.f32.mrb[1].mxu1 }
 0x1be   :  { %402 = vst [vmem:[#allocation2] sm:$0xff] %v339_v0  ;;  %v529_v1 = vpop.f32.mrb[2].mxu1 }
 0x1bf   :  { %405 = vst [vmem:[#allocation2 + $0x18] sm:$0xff] %v529_v1  ;;  %v342_v2 = vpop.f32.mrb[3].mxu1 }
 0x1c0   :  { %403 = vst [vmem:[#allocation2 + $0x8] sm:$0xff] %v342_v2 }
 0x1c4   :  { %v532_v3 = vpop.f32.mrb[4].mxu1 }
 0x1c5   :  { %408 = vst [vmem:[#allocation2 + $0x30] sm:$0xff] %v532_v3  ;;  %v355_v4 = vpop.f32.mrb[5].mxu1 }
 0x1c6   :  { %406 = vst [vmem:[#allocation2 + $0x20] sm:$0xff] %v355_v4  ;;  %v533_v5 = vpop.f32.mrb[6].mxu1 }
 0x1c7   :  { %409 = vst [vmem:[#allocation2 + $0x38] sm:$0xff] %v533_v5  ;;  %v358_v6 = vpop.f32.mrb[7].mxu1 }
 0x1c8   :  { %407 = vst [vmem:[#allocation2 + $0x28] sm:$0xff] %v358_v6 }
 0x1cc   :  { %v536_v7 = vpop.f32.mrb[8].mxu1 }
 0x1cd   :  { %412 = vst [vmem:[#allocation2 + $0x50] sm:$0xff] %v536_v7  ;;  %v371_v8 = vpop.f32.mrb[9].mxu1 }
 0x1ce   :  { %410 = vst [vmem:[#allocation2 + $0x40] sm:$0xff] %v371_v8  ;;  %v537_v9 = vpop.f32.mrb[10].mxu1 }
 0x1cf   :  { %413 = vst [vmem:[#allocation2 + $0x58] sm:$0xff] %v537_v9  ;;  %v374_v10 = vpop.f32.mrb[11].mxu1 }
 0x1d0   :  { %411 = vst [vmem:[#allocation2 + $0x48] sm:$0xff] %v374_v10 }
 0x1d4   :  { %v540_v11 = vpop.f32.mrb[12].mxu1 }
 0x1d5   :  { %416 = vst [vmem:[#allocation2 + $0x70] sm:$0xff] %v540_v11  ;;  %v387_v12 = vpop.f32.mrb[13].mxu1 }
 0x1d6   :  { %414 = vst [vmem:[#allocation2 + $0x60] sm:$0xff] %v387_v12  ;;  %v541_v13 = vpop.f32.mrb[14].mxu1 }
 0x1d7   :  { %417 = vst [vmem:[#allocation2 + $0x78] sm:$0xff] %v541_v13  ;;  %v390_v14 = vpop.f32.mrb[15].mxu1 }
 0x1d8   :  { %415 = vst [vmem:[#allocation2 + $0x68] sm:$0xff] %v390_v14 }
 0x1d9   :  { %565 = shalt.err (!%p562_p4)
}
 0x1da   :  { %s566_s8 = scalar_lea.hbm %s773_s4, 2048 }
 0x1db   :  { %p567_p5 = scmp.ne.s32.totalorder %s773_s4, %s566_s8  ;;  %p570_p6 = scmp.lt.u32.totalorder %s566_s8, %s773_s4 }
 0x1dd   :  { %p572_p7 = pnand %p570_p6, %p567_p5 }
 0x1df   :  { %575 = shalt.err (!%p572_p7)
}
 0x1e0   :  { %s579_s13 = smov 128   ;;  %s580_s14 = smov 8  }
 0x1e1   :  { %431 = dma.vmem_to_hbm [thread:$0]  %s426_s5, 2048, %s773_s4, [#allocation3], %s579_s13, %s579_s13, %s580_s14  }
 0x1e2   :  { %576 = dma.done.wait [#allocation3], 2048  }
 0x1e3   :  { %577 = vsyncadd [#allocation3], 4294965248 }
 0x1e4   :  { %437 = vsyncpa [#allocation3], 1 }

</bundles_post_ra>
